<compile_context>
chip_gen: v7x
topology: tpu7x:2x2x1
jax: 0.10.0
libtpu: 0.0.40
codegen_flags: <defaults>
</compile_context>

<pallas_src>
import jax
import jax.numpy as jnp
from jax.experimental import pallas as pl
from jax.experimental.pallas import tpu as pltpu


_NEG_BIG = -1e30  # bias for pad lanes: exp(-1e30 - m) underflows to exactly 0


def _round_up(x, m):
    return ((x + m - 1) // m) * m


def _pick_row_tile(s, target):
    """Row tile: full S if it fits, else the (multiple-of-8) target."""
    target = max(8, (target // 8) * 8)
    if s <= target:
        return s          # block == full array dim along S -> always legal
    return target         # multiple of 8; last block may be ragged (masked)


def _make_kernel(cpv, inv_s, s_total, t_s, needs_mask):
    """Build the kernel closure.

    cpv       : padded verb-head width (lane offset of the noun head)
    inv_s     : 1 / (T*H*W), the mean normalizer
    s_total   : total number of valid rows (for ragged-tile masking)
    t_s       : row-tile size
    needs_mask: whether the last S tile is ragged
    """

    def kernel(xa_ref, xv_ref, wa_ref, wv_ref, b_ref, o_ref, acc_ref):
        # xa_ref: (1, tS, Fa)   audio rows        wa_ref: (Fa, Cp) fused weight
        # xv_ref: (1, tS, Fv)   video rows        wv_ref: (Fv, Cp) fused weight
        # b_ref : (1, Cp) f32   fused bias (-1e30 on pad lanes)
        # o_ref : (1, 1, Cp)    fused (verb||noun) softmax-mean output
        # acc_ref: (1, Cp) f32  persistent row-sum accumulator
        s = pl.program_id(1)

        @pl.when(s == 0)
        def _init():
            acc_ref[...] = jnp.zeros_like(acc_ref)

        # Fused projection for both heads on the MXU.  The audio/video concat is
        # expressed as a sum of two matmuls; accumulation is f32.
        logits = (
            jnp.dot(xa_ref[0], wa_ref[...], preferred_element_type=jnp.float32)
            + jnp.dot(xv_ref[0], wv_ref[...], preferred_element_type=jnp.float32)
            + b_ref[...]
        )  # (tS, Cp) f32

        if needs_mask:
            # Global row index of each sublane in this tile; rows >= S are
            # garbage (ragged last block) and must not contribute to the mean.
            row = jax.lax.broadcasted_iota(jnp.int32, (t_s, 1), 0) + s * t_s
            valid = row < s_total
        else:
            valid = None

        def softmax_rowsum(l):
            # Per-row softmax over the lane (class) axis, then sum over rows.
            m = jnp.max(l, axis=-1, keepdims=True)
            e = jnp.exp(l - m)                          # pad lanes -> exactly 0
            p = e / jnp.sum(e, axis=-1, keepdims=True)
            if valid is not None:
                p = jnp.where(valid, p, 0.0)            # drop ragged rows
            return jnp.sum(p, axis=0, keepdims=True)    # (1, width) f32

        # 128-aligned slices; accumulate each head in place (no concat copy).
        acc_ref[:, :cpv] += softmax_rowsum(logits[:, :cpv])   # verb head
        acc_ref[:, cpv:] += softmax_rowsum(logits[:, cpv:])   # noun head

        @pl.when(s == pl.num_programs(1) - 1)
        def _finalize():
            # Mean over ALL S = T*H*W rows (not just this tile's rows).
            o_ref[0] = (acc_ref[...] * inv_s).astype(o_ref.dtype)

    return kernel


def mm_mid_slowfast_head(audio_features, video_features, wv, bv, wn, bn,
                         *, compute_dtype=None, row_tile=256):
    """Pallas implementation of MMMidSlowFastHead.forward (eval mode, softmax).

    audio_features: (B, T, H, W, Fa); video_features: (B, T, H, W, Fv)
    wv: (F, V), bv: (V,), wn: (F, N), bn: (N,)   with F = Fa + Fv
    compute_dtype: optional dtype for the streamed activations/weights
                   (e.g. jnp.bfloat16); accumulation & softmax stay f32.
    returns: (x_v, x_n) with shapes (B, V), (B, N), float32.
    """
    B, T, H, W, Fa = audio_features.shape
    Fv = video_features.shape[-1]
    F = Fa + Fv
    V = wv.shape[1]
    N = wn.shape[1]
    S = T * H * W

    dtype = jnp.dtype(compute_dtype) if compute_dtype is not None else audio_features.dtype
    itemsize = dtype.itemsize

    # Layout-only reshape (no transpose, no concat): (B, T, H, W, F*) -> (B, S, F*)
    xa = audio_features.reshape(B, S, Fa).astype(dtype)
    xb = video_features.reshape(B, S, Fv).astype(dtype)

    # Fuse verb & noun heads into one lane-padded weight/bias:
    #   lanes [0, Cpv)       -> verb head (real classes in [0, V))
    #   lanes [Cpv, Cpv+Cpn) -> noun head (real classes in [Cpv, Cpv+N))
    Cpv = _round_up(V, 128)
    Cpn = _round_up(N, 128)
    Cp = Cpv + Cpn

    w_all = jnp.zeros((F, Cp), dtype=dtype)
    w_all = w_all.at[:, :V].set(wv.astype(dtype))
    w_all = w_all.at[:, Cpv:Cpv + N].set(wn.astype(dtype))
    wa_all = w_all[:Fa]      # audio slice of the fused weight
    wb_all = w_all[Fa:]      # video slice of the fused weight

    b_all = jnp.full((1, Cp), _NEG_BIG, dtype=jnp.float32)
    b_all = b_all.at[0, :V].set(bv.astype(jnp.float32))
    b_all = b_all.at[0, Cpv:Cpv + N].set(bn.astype(jnp.float32))

    tS = _pick_row_tile(S, row_tile)
    n_s = (S + tS - 1) // tS
    needs_mask = (S % tS) != 0

    # Scoped-VMEM budget from the actual (layout-padded) block footprint:
    #   double-buffered x tiles + double-buffered weights + small constants.
    def _lane(n): return _round_up(n, 128)
    def _sub(n):  return _round_up(n, 8)
    est = 2 * _sub(tS) * (_lane(Fa) + _lane(Fv)) * itemsize          # x tiles (2 bufs)
    est += 2 * (_sub(Fa) + _sub(Fv)) * Cp * itemsize                 # weights (2 bufs)
    est += 8 * Cp * 4                                                # bias/out/acc
    vmem_limit = int(min(max(est * 1.4 + (4 << 20), 32 << 20), 100 << 20))

    kernel = _make_kernel(Cpv, 1.0 / float(S), S, tS, needs_mask)

    out = pl.pallas_call(
        kernel,
        out_shape=jax.ShapeDtypeStruct((B, 1, Cp), jnp.float32),
        grid_spec=pltpu.PrefetchScalarGridSpec(
            num_scalar_prefetch=0,
            grid=(B, n_s),
            in_specs=[
                pl.BlockSpec((1, tS, Fa), lambda b, s: (b, s, 0)),   # audio rows
                pl.BlockSpec((1, tS, Fv), lambda b, s: (b, s, 0)),   # video rows
                pl.BlockSpec((Fa, Cp), lambda b, s: (0, 0)),         # fused W (audio part)
                pl.BlockSpec((Fv, Cp), lambda b, s: (0, 0)),         # fused W (video part)
                pl.BlockSpec((1, Cp), lambda b, s: (0, 0)),          # fused bias (f32)
            ],
            out_specs=pl.BlockSpec((1, 1, Cp), lambda b, s: (b, 0, 0)),
            scratch_shapes=[pltpu.VMEM((1, Cp), jnp.float32)],
        ),
        compiler_params=pltpu.CompilerParams(
            dimension_semantics=("parallel", "arbitrary"),
            vmem_limit_bytes=vmem_limit,
        ),
    )(xa, xb, wa_all, wb_all, b_all)

    out = out[:, 0, :]
    return out[:, :V], out[:, Cpv:Cpv + N]


def _reference(audio, video, wv, bv, wn, bn):
    """Pure-JAX reference mirroring the PyTorch eval-mode forward."""
    x = jnp.concatenate([audio, video], axis=-1)
    xv = jnp.einsum("bthwf,fc->bthwc", x, wv) + bv
    xn = jnp.einsum("bthwf,fc->bthwc", x, wn) + bn
    xv = jax.nn.softmax(xv, axis=4).mean(axis=(1, 2, 3))
    xn = jax.nn.softmax(xn, axis=4).mean(axis=(1, 2, 3))
    return xv, xn


if __name__ == "__main__":
    # Small shapes consistent with the module's 5-D (B, T, H, W, feat) inputs.
    # (The real module hard-codes F=4608; here Fa+Fv=512 to stay small.)
    B, T, H, W = 2, 2, 4, 4
    Fa, Fv = 192, 320
    F = Fa + Fv
    V, N = 16, 24  # (verb, noun) class counts
    S = T * H * W  # 32 rows

    key = jax.random.PRNGKey(0)
    k_a, k_v, k_wv, k_bv, k_wn, k_bn = jax.random.split(key, 6)

    audio = jax.random.normal(k_a, (B, T, H, W, Fa), dtype=jnp.float32)
    video = jax.random.normal(k_v, (B, T, H, W, Fv), dtype=jnp.float32)

    # Deterministic synthetic parameters (stored as (F, C), i.e. W^T of nn.Linear).
    wv = jax.random.normal(k_wv, (F, V), dtype=jnp.float32) * 0.02
    bv = jax.random.normal(k_bv, (V,), dtype=jnp.float32) * 0.02
    wn = jax.random.normal(k_wn, (F, N), dtype=jnp.float32) * 0.02
    bn = jax.random.normal(k_bn, (N,), dtype=jnp.float32) * 0.02

    ref_v, ref_n = _reference(audio, video, wv, bv, wn, bn)

    # 1) f32, divisible row tiling (exercises the multi-step accumulator path).
    x_v, x_n = mm_mid_slowfast_head(audio, video, wv, bv, wn, bn, row_tile=8)
    jax.block_until_ready((x_v, x_n))
    assert x_v.shape == (B, V) and x_n.shape == (B, N)
    assert jnp.allclose(x_v, ref_v, atol=1e-5, rtol=1e-5)
    assert jnp.allclose(x_n, ref_n, atol=1e-5, rtol=1e-5)

    # 2) f32, ragged row tiling (S=32, tS=24 -> last tile masked in-kernel).
    xr_v, xr_n = mm_mid_slowfast_head(audio, video, wv, bv, wn, bn, row_tile=24)
    jax.block_until_ready((xr_v, xr_n))
    assert jnp.allclose(xr_v, ref_v, atol=1e-5, rtol=1e-5)
    assert jnp.allclose(xr_n, ref_n, atol=1e-5, rtol=1e-5)

    # 3) bf16 streaming of x / weights (halves HBM bytes of the dominant x
    #    stream when inputs are already bf16); softmax outputs live in [0, 1]
    #    so a loose absolute tolerance is the right check.
    xbf_v, xbf_n = mm_mid_slowfast_head(audio, video, wv, bv, wn, bn,
                                        compute_dtype=jnp.bfloat16, row_tile=8)
    jax.block_until_ready((xbf_v, xbf_n))
    assert jnp.allclose(xbf_v, ref_v, atol=5e-3)
    assert jnp.allclose(xbf_n, ref_n, atol=5e-3)

    print("KERNEL_OK")
</pallas_src>

<mosaic_0001>
module attributes {stable_mosaic.version = 11 : i64} {
  func.func @kernel(%arg0: i32, %arg1: i32, %arg2: memref<1x8x192xf32, #tpu.memory_space<vmem>>, %arg3: memref<1x8x320xf32, #tpu.memory_space<vmem>>, %arg4: memref<192x256xf32, #tpu.memory_space<vmem>>, %arg5: memref<320x256xf32, #tpu.memory_space<vmem>>, %arg6: memref<1x256xf32, #tpu.memory_space<vmem>>, %arg7: memref<1x1x256xf32, #tpu.memory_space<vmem>>, %arg8: memref<1x256xf32, #tpu.memory_space<vmem>>) attributes {dimension_semantics = [#tpu.dimension_semantics<parallel>, #tpu.dimension_semantics<arbitrary>], iteration_bounds = array<i64: 2, 4>, scalar_prefetch = 0 : i64, scratch_operands = 1 : i64, tpu.core_type = #tpu.core_type<tc>, window_params = [{transform_indices = @transform_0, window_bounds = array<i64: 1, 8, 192>}, {transform_indices = @transform_1, window_bounds = array<i64: 1, 8, 320>}, {pipeline_mode = #tpu.pipeline_mode<synchronous>, transform_indices = @transform_2, window_bounds = array<i64: 192, 256>}, {pipeline_mode = #tpu.pipeline_mode<synchronous>, transform_indices = @transform_3, window_bounds = array<i64: 320, 256>}, {pipeline_mode = #tpu.pipeline_mode<synchronous>, transform_indices = @transform_4, window_bounds = array<i64: 1, 256>}, {transform_indices = @transform_5, window_bounds = array<i64: 1, 1, 256>}]} {
    %c0_i32 = arith.constant 0 : i32
    %0 = arith.cmpi eq, %arg1, %c0_i32 : i32
    %1 = arith.extui %0 : i1 to i32
    %c0_i32_0 = arith.constant 0 : i32
    %2 = arith.cmpi ne, %1, %c0_i32_0 : i32
    scf.if %2 {
      %cst_27 = arith.constant 0.000000e+00 : f32
      %48 = vector.broadcast %cst_27 : f32 to vector<1x256xf32>
      %c0_28 = arith.constant 0 : index
      %c0_29 = arith.constant 0 : index
      %49 = vector.load %arg8[%c0_28, %c0_29] : memref<1x256xf32, #tpu.memory_space<vmem>>, vector<1x256xf32>
      tpu.vector_store %arg8[%c0_28, %c0_29], %48 {strides = array<i32>} : memref<1x256xf32, #tpu.memory_space<vmem>>, vector<1x256xf32>,
    } else {
    }
    %c0 = arith.constant 0 : index
    %c0_1 = arith.constant 0 : index
    %c0_2 = arith.constant 0 : index
    %3 = vector.load %arg2[%c0, %c0_1, %c0_2] : memref<1x8x192xf32, #tpu.memory_space<vmem>>, vector<1x8x192xf32>
    %4 = vector.shape_cast %3 : vector<1x8x192xf32> to vector<8x192xf32>
    %c0_3 = arith.constant 0 : index
    %c0_4 = arith.constant 0 : index
    %5 = vector.load %arg4[%c0_3, %c0_4] : memref<192x256xf32, #tpu.memory_space<vmem>>, vector<192x256xf32>
    %cst = arith.constant dense<0.000000e+00> : vector<8x256xf32>
    %6 = tpu.matmul %4, %5, %cst {dimension_numbers = #tpu.dot_dimension_numbers<[1], [0], [0], [1], [0, 0, 1, 1], [], []>} : vector<8x192xf32>, vector<192x256xf32>, vector<8x256xf32> -> vector<8x256xf32>
    %c0_5 = arith.constant 0 : index
    %c0_6 = arith.constant 0 : index
    %c0_7 = arith.constant 0 : index
    %7 = vector.load %arg3[%c0_5, %c0_6, %c0_7] : memref<1x8x320xf32, #tpu.memory_space<vmem>>, vector<1x8x320xf32>
    %8 = vector.shape_cast %7 : vector<1x8x320xf32> to vector<8x320xf32>
    %c0_8 = arith.constant 0 : index
    %c0_9 = arith.constant 0 : index
    %9 = vector.load %arg5[%c0_8, %c0_9] : memref<320x256xf32, #tpu.memory_space<vmem>>, vector<320x256xf32>
    %cst_10 = arith.constant dense<0.000000e+00> : vector<8x256xf32>
    %10 = tpu.matmul %8, %9, %cst_10 {dimension_numbers = #tpu.dot_dimension_numbers<[1], [0], [0], [1], [0, 0, 1, 1], [], []>} : vector<8x320xf32>, vector<320x256xf32>, vector<8x256xf32> -> vector<8x256xf32>
    %11 = arith.addf %6, %10 : vector<8x256xf32>
    %c0_11 = arith.constant 0 : index
    %c0_12 = arith.constant 0 : index
    %12 = vector.load %arg6[%c0_11, %c0_12] : memref<1x256xf32, #tpu.memory_space<vmem>>, vector<1x256xf32>
    %13 = vector.broadcast %12 : vector<1x256xf32> to vector<8x256xf32>
    %14 = arith.addf %11, %13 : vector<8x256xf32>
    %c0_13 = arith.constant 0 : index
    %c0_14 = arith.constant 0 : index
    %15 = vector.load %arg8[%c0_13, %c0_14] : memref<1x256xf32, #tpu.memory_space<vmem>>, vector<1x128xf32>
    %16 = vector.extract_strided_slice %14 {offsets = [0, 0], sizes = [8, 128], strides = [1, 1]} : vector<8x256xf32> to vector<8x128xf32>
    %cst_15 = arith.constant dense<0xFF800000> : vector<8xf32>
    %17 = vector.multi_reduction <maximumf>, %16, %cst_15 [1] : vector<8x128xf32> to vector<8xf32>
    %18 = vector.shape_cast %17 : vector<8xf32> to vector<8x1xf32>
    %19 = vector.broadcast %18 : vector<8x1xf32> to vector<8x128xf32>
    %20 = arith.subf %16, %19 : vector<8x128xf32>
    %21 = math.exp %20 : vector<8x128xf32>
    %cst_16 = arith.constant dense<0.000000e+00> : vector<8xf32>
    %22 = vector.multi_reduction <add>, %21, %cst_16 [1] : vector<8x128xf32> to vector<8xf32>
    %23 = vector.shape_cast %22 : vector<8xf32> to vector<8x1xf32>
    %24 = vector.broadcast %23 : vector<8x1xf32> to vector<8x128xf32>
    %25 = arith.divf %21, %24 : vector<8x128xf32>
    %cst_17 = arith.constant dense<0.000000e+00> : vector<128xf32>
    %26 = vector.multi_reduction <add>, %25, %cst_17 [0] : vector<8x128xf32> to vector<128xf32>
    %27 = vector.shape_cast %26 : vector<128xf32> to vector<1x128xf32>
    %28 = arith.addf %15, %27 : vector<1x128xf32>
    %c0_18 = arith.constant 0 : index
    %c0_19 = arith.constant 0 : index
    %29 = vector.load %arg8[%c0_18, %c0_19] : memref<1x256xf32, #tpu.memory_space<vmem>>, vector<1x128xf32>
    tpu.vector_store %arg8[%c0_18, %c0_19], %28 {strides = array<i32>} : memref<1x256xf32, #tpu.memory_space<vmem>>, vector<1x128xf32>,
    %c0_20 = arith.constant 0 : index
    %c128 = arith.constant 128 : index
    %30 = vector.load %arg8[%c0_20, %c128] : memref<1x256xf32, #tpu.memory_space<vmem>>, vector<1x128xf32>
    %31 = vector.extract_strided_slice %14 {offsets = [0, 128], sizes = [8, 128], strides = [1, 1]} : vector<8x256xf32> to vector<8x128xf32>
    %cst_21 = arith.constant dense<0xFF800000> : vector<8xf32>
    %32 = vector.multi_reduction <maximumf>, %31, %cst_21 [1] : vector<8x128xf32> to vector<8xf32>
    %33 = vector.shape_cast %32 : vector<8xf32> to vector<8x1xf32>
    %34 = vector.broadcast %33 : vector<8x1xf32> to vector<8x128xf32>
    %35 = arith.subf %31, %34 : vector<8x128xf32>
    %36 = math.exp %35 : vector<8x128xf32>
    %cst_22 = arith.constant dense<0.000000e+00> : vector<8xf32>
    %37 = vector.multi_reduction <add>, %36, %cst_22 [1] : vector<8x128xf32> to vector<8xf32>
    %38 = vector.shape_cast %37 : vector<8xf32> to vector<8x1xf32>
    %39 = vector.broadcast %38 : vector<8x1xf32> to vector<8x128xf32>
    %40 = arith.divf %36, %39 : vector<8x128xf32>
    %cst_23 = arith.constant dense<0.000000e+00> : vector<128xf32>
    %41 = vector.multi_reduction <add>, %40, %cst_23 [0] : vector<8x128xf32> to vector<128xf32>
    %42 = vector.shape_cast %41 : vector<128xf32> to vector<1x128xf32>
    %43 = arith.addf %30, %42 : vector<1x128xf32>
    %c0_24 = arith.constant 0 : index
    %c128_25 = arith.constant 128 : index
    %44 = vector.load %arg8[%c0_24, %c128_25] : memref<1x256xf32, #tpu.memory_space<vmem>>, vector<1x128xf32>
    tpu.vector_store %arg8[%c0_24, %c128_25], %43 {strides = array<i32>} : memref<1x256xf32, #tpu.memory_space<vmem>>, vector<1x128xf32>,
    %c3_i32 = arith.constant 3 : i32
    %45 = arith.cmpi eq, %arg1, %c3_i32 : i32
    %46 = arith.extui %45 : i1 to i32
    %c0_i32_26 = arith.constant 0 : i32
    %47 = arith.cmpi ne, %46, %c0_i32_26 : i32
    scf.if %47 {
      %c0_27 = arith.constant 0 : index
      %c0_28 = arith.constant 0 : index
      %48 = vector.load %arg8[%c0_27, %c0_28] : memref<1x256xf32, #tpu.memory_space<vmem>>, vector<1x256xf32>
      %cst_29 = arith.constant 3.125000e-02 : f32
      %49 = vector.broadcast %cst_29 : f32 to vector<1x256xf32>
      %50 = arith.mulf %48, %49 : vector<1x256xf32>
      %c0_30 = arith.constant 0 : index
      %c0_31 = arith.constant 0 : index
      %c0_32 = arith.constant 0 : index
      %51 = vector.load %arg7[%c0_30, %c0_31, %c0_32] : memref<1x1x256xf32, #tpu.memory_space<vmem>>, vector<1x1x256xf32>
      %52 = vector.shape_cast %51 : vector<1x1x256xf32> to vector<1x256xf32>
      %53 = vector.shape_cast %50 : vector<1x256xf32> to vector<1x1x256xf32>
      tpu.vector_store %arg7[%c0_30, %c0_31, %c0_32], %53 {strides = array<i32>} : memref<1x1x256xf32, #tpu.memory_space<vmem>>, vector<1x1x256xf32>,
    } else {
    }
    return
  }
  func.func @transform_0(%arg0: i32, %arg1: i32) -> (i32, i32, i32) {
    %c0_i32 = arith.constant 0 : i32
    %c0_i32_0 = arith.constant 0 : i32
    return %arg0, %arg1, %c0_i32 : i32, i32, i32
  }
  func.func @transform_1(%arg0: i32, %arg1: i32) -> (i32, i32, i32) {
    %c0_i32 = arith.constant 0 : i32
    %c0_i32_0 = arith.constant 0 : i32
    return %arg0, %arg1, %c0_i32 : i32, i32, i32
  }
  func.func @transform_2(%arg0: i32, %arg1: i32) -> (i32, i32) {
    %c0_i32 = arith.constant 0 : i32
    %c0_i32_0 = arith.constant 0 : i32
    %c0_i32_1 = arith.constant 0 : i32
    return %c0_i32, %c0_i32_0 : i32, i32
  }
  func.func @transform_3(%arg0: i32, %arg1: i32) -> (i32, i32) {
    %c0_i32 = arith.constant 0 : i32
    %c0_i32_0 = arith.constant 0 : i32
    %c0_i32_1 = arith.constant 0 : i32
    return %c0_i32, %c0_i32_0 : i32, i32
  }
  func.func @transform_4(%arg0: i32, %arg1: i32) -> (i32, i32) {
    %c0_i32 = arith.constant 0 : i32
    %c0_i32_0 = arith.constant 0 : i32
    %c0_i32_1 = arith.constant 0 : i32
    return %c0_i32, %c0_i32_0 : i32, i32
  }
  func.func @transform_5(%arg0: i32, %arg1: i32) -> (i32, i32, i32) {
    %c0_i32 = arith.constant 0 : i32
    %c0_i32_0 = arith.constant 0 : i32
    %c0_i32_1 = arith.constant 0 : i32
    return %arg0, %c0_i32, %c0_i32_0 : i32, i32, i32
  }
}

</mosaic_0001>

<bundles_post_ra>
// kernel: tpu_custom_call.1
= control target key start
LH: loop header
LB: loop body
LE: loop exit
PB: predicated region body
PF: predicated region fallthrough
CT: control target
= control target key end

     0   :  { %s1846_s0 = inlined_call_operand.hbm [shape: f32[2,32,192], index: 0, kind: input, shape index: {}]   ;;  %s1847_s1 = inlined_call_operand.hbm [shape: f32[2,32,320], index: 1, kind: input, shape index: {}]   ;;  %s1848_s2 = inlined_call_operand.hbm [shape: f32[192,256], index: 2, kind: input, shape index: {}]   ;;  %s1849_s3 = inlined_call_operand.hbm [shape: f32[320,256], index: 3, kind: input, shape index: {}]   ;;  %s1850_s4 = inlined_call_operand.vmem [shape: f32[1,256], index: 4, kind: input, shape index: {}]   ;;  %s1851_s5 = inlined_call_operand.hbm [shape: f32[2,1,256], index: 5, kind: output, shape index: {}]  }
   0x1   :  { %1863 = sst [smem:[#allocation24_spill]] %s1846_s0 }
   0x2   :  { %1864 = sst [smem:[#allocation25_spill]] %s1848_s2 }
   0x3   :  { %1865 = sst [smem:[#allocation26_spill]] %s1849_s3 }
   0x4   :  { %1866 = sst [smem:[#allocation27_spill]] %s1850_s4 }
   0x5   :  { %1867 = sst [smem:[#allocation28_spill]] %s1851_s5 }
   0x6   :  { %10 = vsyncpa [#allocation4], 0 }
   0x7   :  { %12 = vsyncpa [#allocation4 + $0x1], 0 }
   0x8   :  { %13 = vsyncpa [#allocation7], 0 }
   0x9   :  { %15 = vsyncpa [#allocation7 + $0x1], 0 }
   0xa   :  { %16 = vsyncpa [#allocation10], 0 }
   0xb   :  { %17 = vsyncpa [#allocation5], 0 }
   0xc   :  { %19 = vsyncpa [#allocation5 + $0x1], 0  ;;  %s1490_s18 = smov 0   ;;  %s1492_s19 = smov 0  }
   0xd   :  { %s1494_s20 = smov 0   ;;  %s1496_s21 = smov 0  }
   0xe   :  { %s1498_s22 = smov 0   ;;  %s1500_s23 = smov 0  }
   0xf   :  { %s1502_s24 = smov 0   ;;  %s1504_s25 = smov 0  }
  0x10   :  { %s1506_s26 = smov 0   ;;  %s1508_s27 = smov 0  }
  0x11   :  { %s1510_s28 = smov 0  }
  0x12 LB: > { %1868 = sst [smem:[#allocation17_spill]] %s1409_s18  ;;  %s1544_s29 = sadd.s32 4294967295, %s1449_s28   ;;  %s1449_s28 = sphi %s1510_s28, %s25_s28   ;;  %s1445_s27 = sphi %s1508_s27, %s1914_s27   ;;  %s1441_s26 = sphi %s1506_s26, %s1913_s26   ;;  %s1437_s25 = sphi %s1504_s25, %s1912_s25   ;;  %s1433_s24 = sphi %s1502_s24, %s1911_s24   ;;  %s1429_s23 = sphi %s1500_s23, %s1910_s23   ;;  %s1425_s22 = sphi %s1498_s22, %s1909_s22   ;;  %s1421_s21 = sphi %s1496_s21, %s1908_s21   ;;  %s1417_s20 = sphi %s1494_s20, %s1907_s20   ;;  %s1413_s19 = sphi %s1492_s19, %s1906_s19   ;;  %s1409_s18 = sphi %s1490_s18, %s1905_s18  }
  0x13   : > { %1869 = sst [smem:[#allocation18_spill]] %s1433_s24  ;;  %s898_s30 = sadd.s32 4294967294, %s1449_s28  }
  0x14   : > { %1870 = sst [smem:[#allocation19_spill]] %s1437_s25  ;;  %p59_p0 = scmp.ne.s32.totalorder %s1425_s22, %s1421_s21 }
  0x15   : > { %p1853_p1 = scmp.eq.s32.totalorder %s1544_s29, 0  ;;  %p173_p2 = scmp.ne.s32.totalorder %s1417_s20, %s1413_s19 }
  0x16   : > { %p174_p4 = scmp.eq.s32.totalorder %s1544_s29, 7  ;;  %p179_p5 = scmp.ne.s32.totalorder %s1413_s19, %s1409_s18 }
  0x17   : > { %p1554_p3 = por %p1853_p1, %p59_p0  ;;  %p180_p6 = scmp.eq.s32.totalorder %s898_s30, 7 }
  0x18   : > { %p1561_p7 = por %p174_p4, %p173_p2  ;;  %p899_p8 = scmp.ge.s32.totalorder %s1449_s28, 1 }
  0x19   : > { %s1871_s7 = scalar_select %p1554_p3, 1, 0 }
  0x1a   : > { %s1872_s8 = scalar_select %p1561_p7, 1, 0 }
  0x1b   : > { %p1566_p9 = por %p180_p6, %p179_p5  ;;  %p187_p10 = scmp.lt.s32.totalorder %s1449_s28, 9 }
  0x1c   : > { %1873 = sst [smem:[#allocation20_spill]] %s1872_s8  ;;  %s1451_s11 = smov [#allocation8]  }
  0x1d   : > { %s1874_s9 = scalar_select %p1566_p9, 1, 0 }
  0x1e   : > { %p1571_p11 = pnand %p899_p8, %p187_p10  ;;  %s199_s12 = sshll.u32 %s1451_s11, 4  ;;  %s200_s12 = int_to_ptr.vmem [resolvable:$true] %s199_s12 }
  0x1f   : > { %1875 = sst [smem:[#allocation21_spill]] %s1874_s9  ;;  %s1452_s14 = smov [#allocation9]  }
  0x20   : > { %s1876_s10 = scalar_select %p1571_p11, 1, 0 }
  0x21   : > { %p1073_p12 = pneg %p1571_p11  ;;  %s212_s15 = sshll.u32 %s1452_s14, 4  ;;  %s1583_s15 = int_to_ptr.vmem [resolvable:$true] %s212_s15 }
  0x22   : > { %s1878_s2 = sld [smem:[#allocation25_spill]] }
  0x23   : > { %p1579_p13 = pnand %p1073_p12, %p1853_p1 }
  0x25   : > { %p1201_p2 = pneg %p1579_p13 }
  0x28   : > { %s1199_s21 = scalar_lea.hbm %s1878_s2, 6144 }
  0x29   : > { %p1200_p0 = scmp.ne.s32.totalorder %s1878_s2, %s1199_s21  ;;  %p1206_p6 = scmp.lt.u32.totalorder %s1199_s21, %s1878_s2 }
  0x2b   : > { %p1202_p4 = pnand %p1201_p2, %p1200_p0 }
  0x2d   : > { %p1203_p5 = pneg %p1202_p4 }
  0x2f   : > { %p1208_p8 = pnand %p1206_p6, %p1203_p5 }
  0x31   : > { %1211 = shalt.err (!%p1208_p8)
}
  0x32   : > { %s1212_s14 = scalar_lea.vmem %s200_s12, 6144  ;;  %p1220_p9 = scmp.lt.s32.totalorder %s200_s12, %s200_s12 }
  0x33   : > { %p1213_p10 = scmp.ne.s32.totalorder %s200_s12, %s1212_s14  ;;  %p1221_p7 = scmp.lt.s32.totalorder %s1212_s14, %s1212_s14 }
  0x35   : > { %p1215_p12 = pnand %p1213_p10, %p1201_p2  ;;  %p1222_p3 = por %p1221_p7, %p1220_p9 }
  0x37   : > { %p1216_p1 = pneg %p1215_p12 }
  0x39   : > { %p1223_p11 = pnand %p1222_p3, %p1216_p1 }
  0x3b   : > { %1226 = shalt.err (!%p1223_p11)
}
  0x3c   : > { %s1453_s16 = smov 256   ;;  %s1454_s17 = smov 16  }
  0x3d   : > { %1076 = dma.hbm_to_vmem [thread:$0]  (!%p1579_p13), %s1878_s2, 6144, %s200_s12, [#allocation7], %s1453_s16, %s1453_s16, %s1454_s17  }
  0x3e   : > { %s1879_s3 = sld [smem:[#allocation26_spill]] }
  0x44   : > { %s1227_s11 = scalar_lea.hbm %s1879_s3, 10240 }
  0x45   : > { %p1228_p0 = scmp.ne.s32.totalorder %s1879_s3, %s1227_s11  ;;  %p1234_p7 = scmp.lt.u32.totalorder %s1227_s11, %s1879_s3 }
  0x47   : > { %p1230_p1 = pnand %p1228_p0, %p1201_p2 }
  0x49   : > { %p1231_p3 = pneg %p1230_p1 }
  0x4b   : > { %p1236_p9 = pnand %p1234_p7, %p1231_p3 }
  0x4d   : > { %1239 = shalt.err (!%p1236_p9)
}
  0x4e   : > { %s1240_s12 = scalar_lea.vmem %s1583_s15, 10240  ;;  %p1248_p6 = scmp.lt.s32.totalorder %s1583_s15, %s1583_s15 }
  0x4f   : > { %p1241_p11 = scmp.ne.s32.totalorder %s1583_s15, %s1240_s12  ;;  %p1249_p8 = scmp.lt.s32.totalorder %s1240_s12, %s1240_s12 }
  0x51   : > { %p1243_p4 = pnand %p1241_p11, %p1201_p2  ;;  %p1250_p10 = por %p1249_p8, %p1248_p6 }
  0x53   : > { %p1244_p5 = pneg %p1243_p4 }
  0x55   : > { %p1251_p12 = pnand %p1250_p10, %p1244_p5 }
  0x57   : > { %1254 = shalt.err (!%p1251_p12)
}
  0x58   : > { %1079 = dma.hbm_to_vmem [thread:$0]  (!%p1579_p13), %s1879_s3, 10240, %s1583_s15, [#allocation10], %s1453_s16, %s1453_s16, %s1454_s17  }
  0x59   : > { %s34_s8 = sadd.s32 1, %s1441_s26  ;;  %s37_s6 = sadd.s32 1, %s1445_s27 }
  0x5a   : > { %p35_p2 = scmp.ge.s32.totalorder %s34_s8, 4  ;;  %s46_s13 = sadd.s32 1, %s1429_s23 }
  0x5b   : > { %p53_p0 = scmp.ne.s32.totalorder %s1429_s23, %s1425_s22  ;;  %p54_p1 = scmp.eq.s32.totalorder %s1449_s28, 0 }
  0x5c   : > { %s1916_s8 = smov (%p35_p2, %s34_s8), 0  ;;  %s1918_s6 = smov (!%p35_p2, %s37_s6), %s1445_s27 }
  0x5d   : > { %1880 = sst [smem:[#allocation22_spill]] %s1916_s8  ;;  %s42_s9 = ssub.s32 %s1441_s26, %s1916_s8 }
  0x5e   : > { %p1643_p3 = por %p54_p1, %p53_p0  ;;  %p39_p13 = scmp.ge.s32.totalorder %s1918_s6, 2 }
  0x5f   : > { %p1093_p7 = scmp.lt.s32.totalorder %s1449_s28, 8  ;;  %s1649_s15 = sand.u32 1, %s1429_s23  }
  0x60   : > { %s904_s16 = sshll.u32 %s1441_s26, 1  ;;  %s1920_s6 = smov (%p39_p13, %s1918_s6), 0 }
  0x61   : > { %1882 = sst [smem:[#allocation23_spill]] %s1920_s6  ;;  %s903_s17 = sshll.u32 %s1649_s15, 4 }
  0x62   : > { %s41_s30 = ssub.s32 %s1445_s27, %s1920_s6  ;;  %s905_s14 = sshll.u32 %s1445_s27, 3 }
  0x63   : > { %s43_s11 = sor.u32 %s42_s9, %s41_s30  ;;  %p161_p9 = scmp.eq.s32.totalorder %s41_s30, 0 }
  0x64   : > { %p44_p11 = scmp.eq.s32.totalorder %s43_s11, 0  ;;  %s1883_s12 = sadd.s32 1, %s1417_s20 }
  0x65   : > { %s1661_s5 = scalar_select %p161_p9, %s1417_s20, %s1883_s12  }
  0x66   : > { %s1664_s18 = scalar_select %p44_p11, %s1429_s23, %s46_s13  }
  0x67   : > { %s239_s2 = sadd.s32 %s905_s14, %s904_s16  ;;  %s233_s3 = scalar_lea.vmem [#allocation3], %s903_s17 }
  0x68   : > { %s243_s8 = sshll.u32 %s233_s3, 4  ;;  %s906_s25 = sshll.u32 %s239_s2, 7  ;;  %s1666_s8 = int_to_ptr.vmem [resolvable:$true] %s243_s8 }
  0x69   : > { %s1884_s0 = sld [smem:[#allocation24_spill]]  ;;  %p1677_p4 = pnand %p1093_p7, %p1643_p3 }
  0x6a   : > { %s1055_s2 = smul.u32 24, %s1649_s15  ;;  %s250_s3 = sand.u32 1, %s1449_s28  }
  0x6b   : > { %s230_s9 = scalar_lea.sflag [#allocation4], %s1649_s15  ;;  %p1257_p6 = pneg %p1677_p4 }
  0x6f   : > { %s1671_s6 = scalar_lea.hbm %s1884_s0, %s906_s25  ;;  %s1260_s25 = scalar_lea.hbm %s1884_s0, 2048 }
  0x70   : > { %s1255_s16 = scalar_lea.hbm %s1671_s6, 256  ;;  %p1261_p12 = scmp.lt.u32.totalorder %s1671_s6, %s1884_s0 }
  0x71   : > { %p1256_p5 = scmp.ne.s32.totalorder %s1671_s6, %s1255_s16  ;;  %p1262_p2 = scmp.lt.u32.totalorder %s1260_s25, %s1255_s16 }
  0x72   : > { %p1264_p1 = scmp.lt.u32.totalorder %s1255_s16, %s1671_s6 }
  0x73   : > { %p1258_p8 = pnand %p1257_p6, %p1256_p5  ;;  %p1263_p0 = por %p1262_p2, %p1261_p12 }
  0x75   : > { %p1259_p10 = pneg %p1258_p8  ;;  %p1265_p3 = por %p1264_p1, %p1263_p0 }
  0x77   : > { %p1266_p13 = pnand %p1265_p3, %p1259_p10 }
  0x79   : > { %1269 = shalt.err (!%p1266_p13)
}
  0x7a   : > { %s1270_s30 = scalar_lea.vmem %s1666_s8, 256  ;;  %s1455_s11 = smov [#allocation3]  }
  0x7b   : > { %p1271_p7 = scmp.ne.s32.totalorder %s1666_s8, %s1270_s30  ;;  %s1275_s14 = sshll.u32 %s1455_s11, 4  ;;  %s1276_s14 = int_to_ptr.vmem [resolvable:$false] %s1275_s14 }
  0x7c   : > { %s1277_s12 = scalar_lea.vmem %s1276_s14, 512  ;;  %p1278_p5 = scmp.lt.s32.totalorder %s1666_s8, %s1276_s14 }
  0x7d   : > { %p1273_p9 = pnand %p1271_p7, %p1257_p6  ;;  %p1279_p8 = scmp.lt.s32.totalorder %s1277_s12, %s1270_s30 }
  0x7f   : > { %p1274_p11 = pneg %p1273_p9  ;;  %p1280_p12 = por %p1279_p8, %p1278_p5 }
  0x81   : > { %p1281_p2 = pnand %p1280_p12, %p1274_p11 }
  0x83   : > { %1284 = shalt.err (!%p1281_p2)
}
  0x84   : > { %1083 = dma.hbm_to_vmem [thread:$0]  (!%p1677_p4), %s1671_s6, 256, %s1666_s8, %s230_s9  }
  0x85   : > { %s1056_s16 = smul.u32 3, %s1441_s26  ;;  %s254_s24 = scalar_lea.vmem [#allocation6], %s1055_s2 }
  0x86   : > { %s1057_s4 = smul.u32 12, %s1445_s27  ;;  %s264_s25 = sshll.u32 %s254_s24, 4  ;;  %s1713_s25 = int_to_ptr.vmem [resolvable:$true] %s264_s25 }
  0x87   : > { %s251_s12 = scalar_lea.sflag [#allocation7], %s250_s3  ;;  %s1290_s15 = scalar_lea.hbm %s1847_s1, 3072 }
  0x88   : > { %s260_s21 = sadd.s32 %s1057_s4, %s1056_s16 }
  0x89   : > { %s907_s17 = sshll.u32 %s260_s21, 7 }
  0x8a   : > { %s262_s14 = scalar_lea.hbm %s1847_s1, %s907_s17 }
  0x8b   : > { %s1285_s0 = scalar_lea.hbm %s262_s14, 384  ;;  %p1291_p3 = scmp.lt.u32.totalorder %s262_s14, %s1847_s1 }
  0x8c   : > { %p1286_p10 = scmp.ne.s32.totalorder %s262_s14, %s1285_s0  ;;  %p1292_p13 = scmp.lt.u32.totalorder %s1290_s15, %s1285_s0 }
  0x8d   : > { %p1294_p9 = scmp.lt.u32.totalorder %s1285_s0, %s262_s14 }
  0x8e   : > { %p1288_p0 = pnand %p1286_p10, %p1257_p6  ;;  %p1293_p7 = por %p1292_p13, %p1291_p3 }
  0x90   : > { %p1289_p1 = pneg %p1288_p0  ;;  %p1295_p11 = por %p1294_p9, %p1293_p7 }
  0x92   : > { %p1296_p5 = pnand %p1295_p11, %p1289_p1 }
  0x94   : > { %1299 = shalt.err (!%p1296_p5)
}
  0x95   : > { %s1300_s3 = scalar_lea.vmem %s1713_s25, 384  ;;  %s1456_s16 = smov [#allocation6]  }
  0x96   : > { %p1301_p8 = scmp.ne.s32.totalorder %s1713_s25, %s1300_s3  ;;  %s1305_s4 = sshll.u32 %s1456_s16, 4  ;;  %s1306_s4 = int_to_ptr.vmem [resolvable:$false] %s1305_s4 }
  0x97   : > { %s1307_s24 = scalar_lea.vmem %s1306_s4, 768  ;;  %p1308_p10 = scmp.lt.s32.totalorder %s1713_s25, %s1306_s4 }
  0x98   : > { %p1303_p12 = pnand %p1301_p8, %p1257_p6  ;;  %p1309_p0 = scmp.lt.s32.totalorder %s1307_s24, %s1300_s3 }
  0x9a   : > { %p1304_p2 = pneg %p1303_p12  ;;  %p1310_p3 = por %p1309_p0, %p1308_p10 }
  0x9c   : > { %p1311_p13 = pnand %p1310_p3, %p1304_p2 }
  0x9e   : > { %1314 = shalt.err (!%p1311_p13)
}
  0x9f   : > { %1086 = dma.hbm_to_vmem [thread:$0]  (!%p1677_p4), %s262_s14, 384, %s1713_s25, %s251_s12  }
  0xa0   : > { %p1886_p1 = scmp.ne.s32.totalorder %s1876_s10, 0 }
  0xa1   : > { %s275_s0 = sand.u32 (!%p1886_p1), 1, %s1425_s22   ;;  %p1887_p6 = scmp.ne.s32.totalorder (!%p1886_p1), %s1871_s7, 0 }
  0xa2   : > { %273 = sbr.rel (%p1886_p1) target bundleno = 847 (0x34f), region = 40  ;;  %s909_s21 = sshll.u32 (!%p1886_p1), %s275_s0, 4 }
  0xa3   : > { %s276_s17 = scalar_lea.sflag (!%p1886_p1), [#allocation4], %s275_s0  ;;  %s1741_s30 = scalar_lea.vmem (!%p1886_p1), [#allocation3], %s909_s21 }
  0xa9   : > { %1388 = dma.done.wait (%p1887_p6), %s276_s17, 256  }
  0xaa   : > { %1390 = vsyncadd (%p1887_p6), %s276_s17, 4294967040  ;;  %s284_s13 = sand.u32 1, %s1544_s29   ;;  %s1058_s11 = smul.u32 24, %s275_s0 }
  0xab   : > { %s285_s25 = scalar_lea.sflag [#allocation7], %s284_s13 }
  0xac   : > { %s1748_s14 = scalar_lea.vmem [#allocation6], %s1058_s11 }
  0xad   : > { %1392 = dma.done.wait (%p1887_p6), %s285_s25, 384  }
  0xae   : > { %1394 = vsyncadd (%p1887_p6), %s285_s25, 4294966912  ;;  %p1888_p4 = scmp.eq.s32.totalorder %s1544_s29, 0 }
  0xb0   : > { %1396 = dma.done.wait (%p1888_p4), [#allocation7], 6144   ;;  %p1889_p7 = pmov %p1888_p4 }
  0xb1   : > { %p1890_p9 = pmov %p1888_p4 }
  0xb2   : > { %1398 = vsyncadd (%p1889_p7), [#allocation7], 4294961152 }
  0xb3   : > { %1400 = dma.done.wait (%p1890_p9), [#allocation10], 10240   ;;  %p1891_p11 = pmov %p1888_p4 }
  0xb4   : > { %s325_s10 = sand.u32 1, %s1413_s19   ;;  %s1892_s8 = sld [smem:[#allocation18_spill]] }
  0xb5   : > { %1402 = vsyncadd (%p1891_p11), [#allocation10], 4294957056  ;;  %s1765_s12 = sshll.u32 %s325_s10, 1 }
  0xb6   : > { %s327_s7 = scalar_lea.vmem [#allocation11], %s1765_s12 }
  0xba   : > { %p913_p5 = scmp.ne.s32.totalorder %s1892_s8, 0 }
  0xbb   : > { %v332_v0 = vlaneseq (!%p913_p5)  ;;  %v1457_v1 = vmov (!%p913_p5), 0.0  }
  0xbc   : > { %331 = sbr.rel (%p913_p5) target bundleno = 195 (0xc3), region = 60 }
  0xbd   : > { %vm334_vm0 = vcmp.lt.s32.totalorder (!%p913_p5), %v332_v0, 256 }
  0xbe   : > { %336 = vst.msk [vmem:[#allocation2] sm:$0x3] (!%p913_p5), %vm334_vm0, %v1457_v1 }
  0xc3 PF: > { %v391_v2 = vld [vmem:[#allocation9 + $0x8] sm:$0xff]  ;;  %v393_v3 = vld [vmem:[#allocation9 + $0x18] sm:$0xff]  ;;  %v390_v7 = vld [vmem:[#allocation9] sm:$0xff]  ;;  %v1458_v9 = vmov 0.0   ;;  %vm470_vm1 = vcmask 523264   ;;  %s1893_s15 = sld [smem:[#allocation27_spill]] }
  0xc4   : > { %v455_v4 = vld [vmem:[#allocation9 + $0x208] sm:$0xff]  ;;  %v923_v5 = vpack.c.bf16 %v393_v3, %v391_v2  ;;  %v457_v6 = vld [vmem:[#allocation9 + $0x218] sm:$0xff]  ;;  %v392_v8 = vld [vmem:[#allocation9 + $0x10] sm:$0xff]  ;;  %609 = vmatprep.mubr.f32.mxu0 %v1458_v9  ;;  %s1894_s2 = sld [smem:[#allocation18_spill]] }
  0xc5   : > { %v987_v10 = vpack.c.bf16 %v457_v6, %v455_v4  ;;  %v925_v11 = vpack.c.bf16 %v392_v8, %v390_v7  ;;  %v454_v12 = vld [vmem:[#allocation9 + $0x200] sm:$0xff]  ;;  %v456_v13 = vld [vmem:[#allocation9 + $0x210] sm:$0xff]  ;;  %v395_v14 = vld [vmem:[#allocation9 + $0x28] sm:$0xff] }
  0xc6   : > { %924 = vmatprep.subr.bf16.mxu1 %v923_v5  ;;  %v989_v15 = vpack.c.bf16 %v456_v13, %v454_v12  ;;  %v397_v16 = vld [vmem:[#allocation9 + $0x38] sm:$0xff]  ;;  %v459_v17 = vld [vmem:[#allocation9 + $0x228] sm:$0xff]  ;;  %v394_v21 = vld [vmem:[#allocation9 + $0x20] sm:$0xff] }
  0xc7   : > { %v461_v18 = vld [vmem:[#allocation9 + $0x238] sm:$0xff]  ;;  %988 = vmatprep.subr.bf16.mxu0 %v987_v10  ;;  %926 = vmatpush1.bf16.msra.mxu1 %v925_v11  ;;  %v927_v19 = vpack.c.bf16 %v397_v16, %v395_v14  ;;  %v396_v22 = vld [vmem:[#allocation9 + $0x30] sm:$0xff]  ;;  %v458_v23 = vld [vmem:[#allocation9 + $0x220] sm:$0xff] }
  0xc8   : > { %v991_v20 = vpack.c.bf16 %v461_v18, %v459_v17  ;;  %990 = vmatpush1.bf16.msra.mxu0 %v989_v15  ;;  %v929_v24 = vpack.c.bf16 %v396_v22, %v394_v21  ;;  %v460_v25 = vld [vmem:[#allocation9 + $0x230] sm:$0xff]  ;;  %v399_v26 = vld [vmem:[#allocation9 + $0x48] sm:$0xff]  ;;  %v401_v27 = vld [vmem:[#allocation9 + $0x58] sm:$0xff] }
  0xc9   : > { %928 = vmatprep.subr.bf16.mxu1 %v927_v19  ;;  %v993_v28 = vpack.c.bf16 %v460_v25, %v458_v23  ;;  %v931_v29 = vpack.c.bf16 %v401_v27, %v399_v26  ;;  %v463_v30 = vld [vmem:[#allocation9 + $0x248] sm:$0xff]  ;;  %v465_v31 = vld [vmem:[#allocation9 + $0x258] sm:$0xff]  ;;  %v398_v32 = vld [vmem:[#allocation9 + $0x40] sm:$0xff] }
  0xca   : > { %992 = vmatprep.subr.bf16.mxu0 %v991_v20  ;;  %v995_v33 = vpack.c.bf16 %v465_v31, %v463_v30  ;;  %v400_v34 = vld [vmem:[#allocation9 + $0x50] sm:$0xff]  ;;  %v462_v35 = vld [vmem:[#allocation9 + $0x240] sm:$0xff]  ;;  %v403_v38 = vld [vmem:[#allocation9 + $0x68] sm:$0xff]  ;;  %p916_p8 = scmp.ne.s32.totalorder %s1894_s2, 3 }
  0xcb   : > { %v464_v36 = vld [vmem:[#allocation9 + $0x250] sm:$0xff]  ;;  %930 = vmatpush1.bf16.msra.mxu1 %v929_v24  ;;  %v933_v37 = vpack.c.bf16 %v400_v34, %v398_v32  ;;  %v405_v39 = vld [vmem:[#allocation9 + $0x78] sm:$0xff]  ;;  %v467_v40 = vld [vmem:[#allocation9 + $0x268] sm:$0xff] }
  0xcc   : > { %994 = vmatpush1.bf16.msra.mxu0 %v993_v28  ;;  %932 = vmatprep.subr.bf16.mxu1 %v931_v29  ;;  %v997_v41 = vpack.c.bf16 %v464_v36, %v462_v35  ;;  %v935_v42 = vpack.c.bf16 %v405_v39, %v403_v38  ;;  %v469_v43 = vld [vmem:[#allocation9 + $0x278] sm:$0xff]  ;;  %v402_v44 = vld [vmem:[#allocation9 + $0x60] sm:$0xff]  ;;  %v404_v45 = vld [vmem:[#allocation9 + $0x70] sm:$0xff] }
  0xcd   : > { %996 = vmatprep.subr.bf16.mxu0 %v995_v33  ;;  %v999_v46 = vpack.c.bf16 %v469_v43, %v467_v40  ;;  %v466_v47 = vld [vmem:[#allocation9 + $0x260] sm:$0xff]  ;;  %v468_v48 = vld [vmem:[#allocation9 + $0x270] sm:$0xff]  ;;  %v407_v49 = vld [vmem:[#allocation9 + $0x88] sm:$0xff]  ;;  %v937_v53 = vpack.c.bf16 %v404_v45, %v402_v44 }
  0xce   : > { %v409_v50 = vld [vmem:[#allocation9 + $0x98] sm:$0xff]  ;;  %v340_v51 = vld [vmem:[#allocation8 + $0x8] sm:$0xff]  ;;  %v1001_v54 = vpack.c.bf16 %v468_v48, %v466_v47  ;;  %v406_v56 = vld [vmem:[#allocation9 + $0x80] sm:$0xff] }
  0xcf   : > { %v342_v52 = vld [vmem:[#allocation8 + $0x18] sm:$0xff]  ;;  %934 = vmatpush1.bf16.msra.mxu1 %v933_v37  ;;  %v939_v55 = vpack.c.bf16 %v409_v50, %v407_v49  ;;  %v408_v57 = vld [vmem:[#allocation9 + $0x90] sm:$0xff]  ;;  %v339_v58 = vld [vmem:[#allocation8] sm:$0xff] }
  0xd0   : > { %998 = vmatpush1.bf16.msra.mxu0 %v997_v41  ;;  %936 = vmatprep.subr.bf16.mxu1 %v935_v42  ;;  %v1003_v59 = vpack.c.bf16 %v342_v52, %v340_v51  ;;  %v341_v60 = vld [vmem:[#allocation8 + $0x10] sm:$0xff]  ;;  %v411_v61 = vld [vmem:[#allocation9 + $0xa8] sm:$0xff]  ;;  %v413_v62 = vld [vmem:[#allocation9 + $0xb8] sm:$0xff]  ;;  %v941_v1 = vpack.c.bf16 %v408_v57, %v406_v56 }
  0xd1   : > { %1000 = vmatprep.subr.bf16.mxu0 %v999_v46  ;;  %v344_v63 = vld [vmem:[#allocation8 + $0x28] sm:$0xff]  ;;  %v346_v0 = vld [vmem:[#allocation8 + $0x38] sm:$0xff]  ;;  %v1005_v3 = vpack.c.bf16 %v341_v60, %v339_v58  ;;  %v943_v4 = vpack.c.bf16 %v413_v62, %v411_v61  ;;  %v410_v5 = vld [vmem:[#allocation9 + $0xa0] sm:$0xff] }
  0xd2   : > { %v389_v2 = vld [vmem:[%s1748_s14 + $0x10] sm:$0xff]  ;;  %v412_v6 = vld [vmem:[#allocation9 + $0xb0] sm:$0xff]  ;;  %v1007_v8 = vpack.c.bf16 %v346_v0, %v344_v63  ;;  %v415_v10 = vld [vmem:[#allocation9 + $0xc8] sm:$0xff] }
  0xd3   : > { %938 = vmatpush1.bf16.msra.mxu1 %v937_v53  ;;  %v343_v7 = vld [vmem:[#allocation8 + $0x20] sm:$0xff]  ;;  %v345_v9 = vld [vmem:[#allocation8 + $0x30] sm:$0xff]  ;;  %v417_v11 = vld [vmem:[#allocation9 + $0xd8] sm:$0xff]  ;;  %v945_v14 = vpack.c.bf16 %v412_v6, %v410_v5 }
  0xd4   : > { %1002 = vmatpush1.bf16.msra.mxu0 %v1001_v54  ;;  %940 = vmatprep.subr.bf16.mxu1 %v939_v55  ;;  %v348_v12 = vld [vmem:[#allocation8 + $0x48] sm:$0xff]  ;;  %v350_v13 = vld [vmem:[#allocation8 + $0x58] sm:$0xff]  ;;  %v1009_v15 = vpack.c.bf16 %v345_v9, %v343_v7  ;;  %v947_v16 = vpack.c.bf16 %v417_v11, %v415_v10  ;;  %v414_v17 = vld [vmem:[#allocation9 + $0xc0] sm:$0xff] }
  0xd5   : > { %1004 = vmatprep.subr.bf16.mxu0 %v1003_v59  ;;  %v416_v18 = vld [vmem:[#allocation9 + $0xd0] sm:$0xff]  ;;  %v347_v19 = vld [vmem:[#allocation8 + $0x40] sm:$0xff]  ;;  %v1011_v20 = vpack.c.bf16 %v350_v13, %v348_v12  ;;  %v419_v22 = vld [vmem:[#allocation9 + $0xe8] sm:$0xff] }
  0xd6   : > { %v349_v21 = vld [vmem:[#allocation8 + $0x50] sm:$0xff]  ;;  %v421_v23 = vld [vmem:[#allocation9 + $0xf8] sm:$0xff]  ;;  %v352_v24 = vld [vmem:[#allocation8 + $0x68] sm:$0xff]  ;;  %v949_v26 = vpack.c.bf16 %v416_v18, %v414_v17 }
  0xd7   : > { %942 = vmatpush1.bf16.msra.mxu1 %v941_v1  ;;  %914 = vmatmul.mubr.msk.f32.vlgmr.msra.gmra.mrb[0].mxu0 %vm470_vm1, %v389_v2  ;;  %v354_v25 = vld [vmem:[#allocation8 + $0x78] sm:$0xff]  ;;  %v1013_v27 = vpack.c.bf16 %v349_v21, %v347_v19  ;;  %v951_v28 = vpack.c.bf16 %v421_v23, %v419_v22  ;;  %v418_v29 = vld [vmem:[#allocation9 + $0xe0] sm:$0xff]  ;;  %v420_v30 = vld [vmem:[#allocation9 + $0xf0] sm:$0xff] }
  0xd8   : > { %1006 = vmatpush1.bf16.msra.mxu0 %v1005_v3  ;;  %944 = vmatprep.subr.bf16.mxu1 %v943_v4  ;;  %v351_v31 = vld [vmem:[#allocation8 + $0x60] sm:$0xff]  ;;  %v1015_v32 = vpack.c.bf16 %v354_v25, %v352_v24  ;;  %v353_v33 = vld [vmem:[#allocation8 + $0x70] sm:$0xff]  ;;  %v423_v34 = vld [vmem:[#allocation9 + $0x108] sm:$0xff]  ;;  %v953_v38 = vpack.c.bf16 %v420_v30, %v418_v29 }
  0xd9   : > { %1008 = vmatprep.subr.bf16.mxu0 %v1007_v8  ;;  %v425_v35 = vld [vmem:[#allocation9 + $0x118] sm:$0xff]  ;;  %v356_v36 = vld [vmem:[#allocation8 + $0x88] sm:$0xff]  ;;  %v1017_v39 = vpack.c.bf16 %v353_v33, %v351_v31  ;;  %v422_v41 = vld [vmem:[#allocation9 + $0x100] sm:$0xff] }
  0xda   : > { %v358_v37 = vld [vmem:[#allocation8 + $0x98] sm:$0xff]  ;;  %v955_v40 = vpack.c.bf16 %v425_v35, %v423_v34  ;;  %v424_v42 = vld [vmem:[#allocation9 + $0x110] sm:$0xff]  ;;  %v355_v43 = vld [vmem:[#allocation8 + $0x80] sm:$0xff] }
  0xdb   : > { %946 = vmatpush1.bf16.msra.mxu1 %v945_v14  ;;  %v1019_v44 = vpack.c.bf16 %v358_v37, %v356_v36  ;;  %v357_v45 = vld [vmem:[#allocation8 + $0x90] sm:$0xff]  ;;  %v427_v46 = vld [vmem:[#allocation9 + $0x128] sm:$0xff]  ;;  %v429_v47 = vld [vmem:[#allocation9 + $0x138] sm:$0xff]  ;;  %v957_v50 = vpack.c.bf16 %v424_v42, %v422_v41 }
  0xdc   : > { %1010 = vmatpush1.bf16.msra.mxu0 %v1009_v15  ;;  %948 = vmatprep.subr.bf16.mxu1 %v947_v16  ;;  %v360_v48 = vld [vmem:[#allocation8 + $0xa8] sm:$0xff]  ;;  %v362_v49 = vld [vmem:[#allocation8 + $0xb8] sm:$0xff]  ;;  %v1021_v51 = vpack.c.bf16 %v357_v45, %v355_v43  ;;  %v959_v52 = vpack.c.bf16 %v429_v47, %v427_v46  ;;  %v426_v53 = vld [vmem:[#allocation9 + $0x120] sm:$0xff] }
  0xdd   : > { %1012 = vmatprep.subr.bf16.mxu0 %v1011_v20  ;;  %v428_v54 = vld [vmem:[#allocation9 + $0x130] sm:$0xff]  ;;  %v359_v55 = vld [vmem:[#allocation8 + $0xa0] sm:$0xff]  ;;  %v1023_v56 = vpack.c.bf16 %v362_v49, %v360_v48  ;;  %v431_v58 = vld [vmem:[#allocation9 + $0x148] sm:$0xff] }
  0xde   : > { %v361_v57 = vld [vmem:[#allocation8 + $0xb0] sm:$0xff]  ;;  %v433_v59 = vld [vmem:[#allocation9 + $0x158] sm:$0xff]  ;;  %v364_v60 = vld [vmem:[#allocation8 + $0xc8] sm:$0xff]  ;;  %v961_v62 = vpack.c.bf16 %v428_v54, %v426_v53 }
  0xdf   : > { %950 = vmatpush1.bf16.msra.mxu1 %v949_v26  ;;  %v366_v61 = vld [vmem:[#allocation8 + $0xd8] sm:$0xff]  ;;  %v1025_v63 = vpack.c.bf16 %v361_v57, %v359_v55  ;;  %v963_v0 = vpack.c.bf16 %v433_v59, %v431_v58  ;;  %v430_v1 = vld [vmem:[#allocation9 + $0x140] sm:$0xff]  ;;  %v432_v2 = vld [vmem:[#allocation9 + $0x150] sm:$0xff] }
  0xe0   : > { %1014 = vmatpush1.bf16.msra.mxu0 %v1013_v27  ;;  %952 = vmatprep.subr.bf16.mxu1 %v951_v28  ;;  %v363_v3 = vld [vmem:[#allocation8 + $0xc0] sm:$0xff]  ;;  %v1027_v4 = vpack.c.bf16 %v366_v61, %v364_v60  ;;  %v365_v5 = vld [vmem:[#allocation8 + $0xd0] sm:$0xff]  ;;  %v435_v6 = vld [vmem:[#allocation9 + $0x168] sm:$0xff]  ;;  %v965_v10 = vpack.c.bf16 %v432_v2, %v430_v1 }
  0xe1   : > { %1016 = vmatprep.subr.bf16.mxu0 %v1015_v32  ;;  %v437_v7 = vld [vmem:[#allocation9 + $0x178] sm:$0xff]  ;;  %v368_v8 = vld [vmem:[#allocation8 + $0xe8] sm:$0xff]  ;;  %v434_v11 = vld [vmem:[#allocation9 + $0x160] sm:$0xff]  ;;  %v1029_v12 = vpack.c.bf16 %v365_v5, %v363_v3 }
  0xe2   : > { %v370_v9 = vld [vmem:[#allocation8 + $0xf8] sm:$0xff]  ;;  %v967_v13 = vpack.c.bf16 %v437_v7, %v435_v6  ;;  %v436_v14 = vld [vmem:[#allocation9 + $0x170] sm:$0xff]  ;;  %v367_v15 = vld [vmem:[#allocation8 + $0xe0] sm:$0xff] }
  0xe3   : > { %954 = vmatpush1.bf16.msra.mxu1 %v953_v38  ;;  %v369_v16 = vld [vmem:[#allocation8 + $0xf0] sm:$0xff]  ;;  %v1031_v17 = vpack.c.bf16 %v370_v9, %v368_v8  ;;  %v439_v18 = vld [vmem:[#allocation9 + $0x188] sm:$0xff]  ;;  %v441_v19 = vld [vmem:[#allocation9 + $0x198] sm:$0xff]  ;;  %v969_v24 = vpack.c.bf16 %v436_v14, %v434_v11  ;;  %v692_v8 = vlaneseq }
  0xe4   : > { %1018 = vmatpush1.bf16.msra.mxu0 %v1017_v39  ;;  %956 = vmatprep.subr.bf16.mxu1 %v955_v40  ;;  %v372_v20 = vld [vmem:[#allocation8 + $0x108] sm:$0xff]  ;;  %v374_v21 = vld [vmem:[#allocation8 + $0x118] sm:$0xff]  ;;  %v1033_v25 = vpack.c.bf16 %v369_v16, %v367_v15  ;;  %v971_v26 = vpack.c.bf16 %v441_v19, %v439_v18  ;;  %v438_v27 = vld [vmem:[#allocation9 + $0x180] sm:$0xff] }
  0xe5   : > { %1020 = vmatprep.subr.bf16.mxu0 %v1019_v44  ;;  %v388_v22 = vld [vmem:[%s1748_s14 + $0x8] sm:$0xff]  ;;  %v371_v29 = vld [vmem:[#allocation8 + $0x100] sm:$0xff]  ;;  %v1035_v30 = vpack.c.bf16 %v374_v21, %v372_v20  ;;  %v443_v32 = vld [vmem:[#allocation9 + $0x1a8] sm:$0xff]  ;;  %v693_v9 = vshrl.u32 %v692_v8, 7  ;;  %vm723_vm2 = vcmp.lt.s32.totalorder %v692_v8, 128  ;;  %vm750_vm3 = vcmp.lt.s32.totalorder (!%p916_p8), %v692_v8, 256 }
  0xe6   : > { %v338_v23 = vld [vmem:[%s1741_s30 + $0x8] sm:$0xff]  ;;  %538 = vmatprep.mubr.f32.mxu1 %v388_v22  ;;  %v440_v28 = vld [vmem:[#allocation9 + $0x190] sm:$0xff]  ;;  %v442_v39 = vld [vmem:[#allocation9 + $0x1a0] sm:$0xff] }
  0xe7   : > { %958 = vmatpush1.bf16.msra.mxu1 %v957_v50  ;;  %v373_v31 = vld [vmem:[#allocation8 + $0x110] sm:$0xff]  ;;  %v445_v33 = vld [vmem:[#allocation9 + $0x1b8] sm:$0xff]  ;;  %915 = vmatprep.mubr.msk.f32.mxu0 %vm470_vm1, %v338_v23  ;;  %v376_v34 = vld [vmem:[#allocation8 + $0x128] sm:$0xff]  ;;  %v973_v36 = vpack.c.bf16 %v440_v28, %v438_v27  ;;  %v698_v14 = vsub.s32 1, %v693_v9 }
  0xe8   : > { %1022 = vmatpush1.bf16.msra.mxu0 %v1021_v51  ;;  %960 = vmatprep.subr.bf16.mxu1 %v959_v52  ;;  %v378_v35 = vld [vmem:[#allocation8 + $0x138] sm:$0xff]  ;;  %v1037_v37 = vpack.c.bf16 %v373_v31, %v371_v29  ;;  %v975_v38 = vpack.c.bf16 %v445_v33, %v443_v32  ;;  %v444_v40 = vld [vmem:[#allocation9 + $0x1b0] sm:$0xff]  ;;  %v375_v41 = vld [vmem:[#allocation8 + $0x120] sm:$0xff] }
  0xe9   : > { %1024 = vmatprep.subr.bf16.mxu0 %v1023_v56  ;;  %v1039_v42 = vpack.c.bf16 %v378_v35, %v376_v34  ;;  %v377_v43 = vld [vmem:[#allocation8 + $0x130] sm:$0xff]  ;;  %v447_v44 = vld [vmem:[#allocation9 + $0x1c8] sm:$0xff]  ;;  %v449_v45 = vld [vmem:[#allocation9 + $0x1d8] sm:$0xff]  ;;  %v977_v48 = vpack.c.bf16 %v444_v40, %v442_v39 }
  0xea   : > { %v380_v46 = vld [vmem:[#allocation8 + $0x148] sm:$0xff]  ;;  %v382_v47 = vld [vmem:[#allocation8 + $0x158] sm:$0xff]  ;;  %v1041_v49 = vpack.c.bf16 %v377_v43, %v375_v41  ;;  %v979_v50 = vpack.c.bf16 %v449_v45, %v447_v44  ;;  %v446_v51 = vld [vmem:[#allocation9 + $0x1c0] sm:$0xff] }
  0xeb   : > { %962 = vmatpush1.bf16.msra.mxu1 %v961_v62  ;;  %v448_v52 = vld [vmem:[#allocation9 + $0x1d0] sm:$0xff]  ;;  %v379_v53 = vld [vmem:[#allocation8 + $0x140] sm:$0xff]  ;;  %v1043_v54 = vpack.c.bf16 %v382_v47, %v380_v46  ;;  %v451_v56 = vld [vmem:[#allocation9 + $0x1e8] sm:$0xff] }
  0xec   : > { %1026 = vmatpush1.bf16.msra.mxu0 %v1025_v63  ;;  %964 = vmatprep.subr.bf16.mxu1 %v963_v0  ;;  %v381_v55 = vld [vmem:[#allocation8 + $0x150] sm:$0xff]  ;;  %v453_v57 = vld [vmem:[#allocation9 + $0x1f8] sm:$0xff]  ;;  %v384_v58 = vld [vmem:[#allocation8 + $0x168] sm:$0xff]  ;;  %v981_v60 = vpack.c.bf16 %v448_v52, %v446_v51 }
  0xed   : > { %1028 = vmatprep.subr.bf16.mxu0 %v1027_v4  ;;  %v386_v59 = vld [vmem:[#allocation8 + $0x178] sm:$0xff]  ;;  %v1045_v61 = vpack.c.bf16 %v381_v55, %v379_v53  ;;  %v983_v62 = vpack.c.bf16 %v453_v57, %v451_v56  ;;  %v450_v63 = vld [vmem:[#allocation9 + $0x1e0] sm:$0xff]  ;;  %v452_v0 = vld [vmem:[#allocation9 + $0x1f0] sm:$0xff] }
  0xee   : > { %v1047_v1 = vpack.c.bf16 %v386_v59, %v384_v58  ;;  %v383_v2 = vld [vmem:[#allocation8 + $0x160] sm:$0xff]  ;;  %v385_v3 = vld [vmem:[#allocation8 + $0x170] sm:$0xff]  ;;  %v985_v4 = vpack.c.bf16 %v452_v0, %v450_v63  ;;  %v690_v11 = vld [vmem:[%s1893_s15] sm:$0x3] }
  0xef   : > { %966 = vmatpush1.bf16.msra.mxu1 %v965_v10  ;;  %v1049_v5 = vpack.c.bf16 %v385_v3, %v383_v2  ;;  %v387_v6 = vld [vmem:[%s1748_s14] sm:$0xff]  ;;  %v694_v10 = vsub.s32 0, %v693_v9  ;;  %v699_v21 = vrot.slane %v690_v11, %v698_v14 }
  0xf0   : > { %1030 = vmatpush1.bf16.msra.mxu0 %v1029_v12  ;;  %968 = vmatprep.subr.bf16.mxu1 %v967_v13  ;;  %v337_v7 = vld [vmem:[%s1741_s30] sm:$0xff]  ;;  %v704_v45 = vld [vmem:[#allocation2] sm:$0x1] }
  0xf1   : > { %1032 = vmatprep.subr.bf16.mxu0 %v1031_v17  ;;  %v695_v13 = vrot.slane %v690_v11, %v694_v10 }
  0xf3   : > { %970 = vmatpush1.bf16.msra.mxu1 %v969_v24 }
  0xf4   : > { %1034 = vmatpush1.bf16.msra.mxu0 %v1033_v25  ;;  %972 = vmatprep.subr.bf16.mxu1 %v971_v26 }
  0xf5   : > { %1036 = vmatprep.subr.bf16.mxu0 %v1035_v30 }
  0xf7   : > { %974 = vmatpush1.bf16.msra.mxu1 %v973_v36 }
  0xf8   : > { %1038 = vmatpush1.bf16.msra.mxu0 %v1037_v37  ;;  %976 = vmatprep.subr.bf16.mxu1 %v975_v38 }
  0xf9   : > { %1040 = vmatprep.subr.bf16.mxu0 %v1039_v42 }
  0xfb   : > { %978 = vmatpush1.bf16.msra.mxu1 %v977_v48 }
  0xfc   : > { %1042 = vmatpush1.bf16.msra.mxu0 %v1041_v49  ;;  %980 = vmatprep.subr.bf16.mxu1 %v979_v50  ;;  %v726_v50 = vld [vmem:[#allocation2 + $0x1] sm:$0x1] }
  0xfd   : > { %1044 = vmatprep.subr.bf16.mxu0 %v1043_v54 }
  0xff   : > { %982 = vmatpush1.bf16.msra.mxu1 %v981_v60 }
 0x100   : > { %1046 = vmatpush1.bf16.msra.mxu0 %v1045_v61  ;;  %984 = vmatprep.subr.bf16.mxu1 %v983_v62 }
 0x101   : > { %1048 = vmatprep.subr.bf16.mxu0 %v1047_v1 }
 0x103   : > { %986 = vmatpush1.bf16.msra.mxu1 %v985_v4 }
 0x104   : > { %1050 = vmatpush1.bf16.msra.mxu0 %v1049_v5 }
 0x106   : > { %539 = vmatmul.mubr.f32.vlgmr.msra.gmra.mrb[0].mxu1 %v387_v6 }
 0x107   : > { %684 = vmatmul.mubr.f32.vlgmr.msra.gmra.mrb[0].mxu0 %v337_v7 }
 0x1d9   : > { %v540_v12 = vpop.f32.mrb[0].mxu1 }
 0x1da   : > { %v685_v15 = vpop.f32.mrb[0].mxu0  ;;  %v542_v16 = vpop.f32.mrb[1].mxu1 }
 0x1db   : > { %v1051_v17 = vadd.f32 %v685_v15, %v540_v12  ;;  %v687_v18 = vpop.f32.mrb[1].mxu0 }
 0x1dc   : > { %v1052_v19 = vadd.f32 %v687_v18, %v542_v16 }
 0x1dd   : > { %v702_v20 = vadd.f32 %v1051_v17, %v695_v13 }
 0x1de   : > { %v703_v22 = vadd.f32 %v1052_v19, %v699_v21 }
 0x1df   : > { %705 = vmax.xlane.f32.xlu0 %v702_v20 }
 0x1e3   : > { %727 = vmax.xlane.f32.xlu0 %v703_v22 }
 0x26c   : > { %v706_v23 = vpop.xlane.xlu0 %705 }
 0x26d   : > { %v707_v24 = vsub.f32 %v702_v20, %v706_v23 }
 0x26f   : > { %v708_v25 = vmul.f32 1.442695, %v707_v24 }
 0x270   : > { %v728_v26 = vpop.xlane.xlu0 %727 }
 0x271   : > { %1191 = vpow2.f32 %v708_v25  ;;  %v729_v27 = vsub.f32 %v703_v22, %v728_v26 }
 0x273   : > { %v730_v28 = vmul.f32 1.442695, %v729_v27 }
 0x275   : > { %1193 = vpow2.f32 %v730_v28 }
 0x27b   : > { %v1192_v29 = vpop.eup %1191 }
 0x27c   : > { %710 = vadd.xlane.f32.xlu1 %v1192_v29 }
 0x27f   : > { %v1194_v30 = vpop.eup %1193 }
 0x280   : > { %732 = vadd.xlane.f32.xlu1 %v1194_v30 }
 0x309   : > { %v711_v31 = vpop.xlane.xlu1 %710 }
 0x30a   : > { %1195 = vrcp.f32 %v711_v31 }
 0x30d   : > { %v733_v32 = vpop.xlane.xlu1 %732 }
 0x30e   : > { %1197 = vrcp.f32 %v733_v32 }
 0x314   : > { %v1196_v33 = vpop.eup %1195 }
 0x315   : > { %v713_v34 = vmul.f32 %v1196_v33, %v1192_v29 }
 0x317   : > { %v714_v35 = vrot.slane %v713_v34, 4 }
 0x318   : > { %v1198_v36 = vpop.eup %1197 }
 0x319   : > { %v715_v37 = vadd.f32 %v714_v35, %v713_v34  ;;  %v735_v38 = vmul.f32 %v1198_v36, %v1194_v30 }
 0x31b   : > { %v716_v39 = vrot.slane %v715_v37, 2  ;;  %v736_v40 = vrot.slane %v735_v38, 4 }
 0x31d   : > { %v717_v41 = vadd.f32 %v716_v39, %v715_v37  ;;  %v737_v42 = vadd.f32 %v736_v40, %v735_v38 }
 0x31f   : > { %v718_v43 = vrot.slane %v717_v41, 1  ;;  %v738_v44 = vrot.slane %v737_v42, 2 }
 0x321   : > { %v719_v46 = vadd.f32 %v718_v43, %v717_v41  ;;  %v739_v47 = vadd.f32 %v738_v44, %v737_v42 }
 0x323   : > { %v720_v48 = vadd.f32 %v719_v46, %v704_v45  ;;  %v740_v49 = vrot.slane %v739_v47, 1  ;;  %747 = sbr.rel (%p916_p8) target bundleno = 820 (0x334), region = 64 }
 0x325   : > { %725 = vst.msk [vmem:[#allocation2] sm:$0x1] %vm723_vm2, %v720_v48  ;;  %v741_v51 = vadd.f32 %v740_v49, %v739_v47 }
 0x327   : > { %v742_v52 = vadd.f32 %v741_v51, %v726_v50 }
 0x329   : > { %743 = vst.msk [vmem:[#allocation2 + $0x1] sm:$0x1] %vm723_vm2, %v742_v52 }
 0x330   : > { %v748_v53 = vld [vmem:[#allocation2] sm:$0x3] }
 0x331   : > { %v749_v54 = vmul.f32 0.03125, %v748_v53 }
 0x333   : > { %752 = vst.msk [vmem:[%s327_s7] sm:$0x3] %vm750_vm3, %v749_v54 }
 0x334 PF: > { %s1895_s9 = sld [smem:[#allocation19_spill]]  ;;  %s1896_s3 = sld [smem:[#allocation20_spill]] }
 0x335   : > { %s1897_s0 = sld [smem:[#allocation28_spill]]  ;;  %s768_s17 = sshll.u32 %s327_s7, 4  ;;  %s769_s17 = int_to_ptr.vmem [resolvable:$true] %s768_s17 }
 0x336   : > { %s754_s30 = scalar_lea.sflag [#allocation5], %s325_s10  ;;  %s1315_s13 = scalar_lea.vmem %s769_s17, 32 }
 0x337   : > { %p1316_p12 = scmp.ne.s32.totalorder %s769_s17, %s1315_s13  ;;  %s1459_s11 = smov [#allocation11]  }
 0x338   : > { %s1319_s25 = sshll.u32 %s1459_s11, 4  ;;  %s1320_s25 = int_to_ptr.vmem [resolvable:$false] %s1319_s25 }
 0x339   : > { %s1321_s14 = scalar_lea.vmem %s1320_s25, 64  ;;  %p1322_p3 = scmp.lt.s32.totalorder %s769_s17, %s1320_s25 }
 0x33a   : > { %s922_s16 = sshll.u32 %s1895_s9, 5  ;;  %p1898_p2 = scmp.ne.s32.totalorder %s1896_s3, 0 }
 0x33b   : > { %s1786_s21 = scalar_lea.hbm %s1897_s0, %s922_s16  ;;  %p1323_p13 = scmp.lt.s32.totalorder %s1321_s14, %s1315_s13 }
 0x33c   : > { %p1317_p10 = pnand %p1316_p12, %p1898_p2 }
 0x33d   : > { %p1324_p1 = por %p1323_p13, %p1322_p3 }
 0x33e   : > { %p1318_p0 = pneg %p1317_p10 }
 0x340   : > { %p1325_p6 = pnand %p1324_p1, %p1318_p0 }
 0x342   : > { %1328 = shalt.err (!%p1325_p6)
}
 0x343   : > { %s1329_s10 = scalar_lea.hbm %s1786_s21, 32  ;;  %s1333_s8 = scalar_lea.hbm %s1897_s0, 64 }
 0x344   : > { %p1330_p4 = scmp.ne.s32.totalorder %s1786_s21, %s1329_s10  ;;  %p1334_p11 = scmp.lt.u32.totalorder %s1786_s21, %s1897_s0 }
 0x345   : > { %p1335_p5 = scmp.lt.u32.totalorder %s1333_s8, %s1329_s10  ;;  %p1337_p12 = scmp.lt.u32.totalorder %s1329_s10, %s1786_s21 }
 0x346   : > { %p1331_p7 = pnand %p1330_p4, %p1898_p2 }
 0x347   : > { %p1336_p8 = por %p1335_p5, %p1334_p11 }
 0x348   : > { %p1332_p9 = pneg %p1331_p7 }
 0x349   : > { %p1338_p10 = por %p1337_p12, %p1336_p8 }
 0x34b   : > { %p1339_p0 = pnand %p1338_p10, %p1332_p9 }
 0x34d   : > { %1342 = shalt.err (!%p1339_p0)
}
 0x34e   : > { %1071 = dma.vmem_to_hbm [thread:$0]  (%p1898_p2), %s769_s17, 32, %s1786_s21, %s754_s30  }
 0x34f PF: > { %s1899_s15 = sld [smem:[#allocation17_spill]]  ;;  %s1900_s2 = sld [smem:[#allocation21_spill]] }
 0x350   : > { %p1096_p3 = scmp.ge.s32.totalorder %s1449_s28, 2 }
 0x355   : > { %s780_s9 = sand.u32 1, %s1899_s15   ;;  %p1901_p13 = scmp.ne.s32.totalorder %s1900_s2, 0 }
 0x356   : > { %s781_s16 = scalar_lea.sflag [#allocation5], %s780_s9 }
 0x357   : > { %p1088_p1 = pnand %p1096_p3, %p1901_p13 }
 0x359   : > { %1404 = dma.done.wait (!%p1088_p1), %s781_s16, 32  }
 0x35a   : > { %1406 = vsyncadd (!%p1088_p1), %s781_s16, 4294967264  ;;  %s25_s28 = sadd.s32 1, %s1449_s28   ;;  %s1902_s3 = smov %s1664_s18 }
 0x35b   : > { %p22_p6 = scmp.ge.s32.totalorder %s25_s28, 10   ;;  %s1903_s4 = sld [smem:[#allocation22_spill]] }
 0x35c   : > { %s1904_s17 = sld [smem:[#allocation23_spill]]  ;;  %s1905_s18 = smov %s1413_s19 }
 0x35d   : > { %s1906_s19 = smov %s1417_s20  ;;  %s1907_s20 = smov %s1661_s5 }
 0x35e   : > { %s1908_s21 = smov %s1425_s22  ;;  %s1909_s22 = smov %s1429_s23 }
 0x35f   : > { %s1910_s23 = smov %s1902_s3  ;;  %s1911_s24 = smov %s1441_s26 }
 0x360   : > { %s1912_s25 = smov %s1445_s27  ;;  %24 = sbr.rel (!%p22_p6) target bundleno = 18 (0x12), region = 114 }
 0x361   : > { %s1913_s26 = smov %s1903_s4 }
 0x362   : > { %s1914_s27 = smov %s1904_s17 }
 0x367   :  { %786 = vsyncpa [#allocation4], 1 }
 0x368   :  { %788 = vsyncpa [#allocation4 + $0x1], 1 }
 0x369   :  { %789 = vsyncpa [#allocation7], 1 }
 0x36a   :  { %791 = vsyncpa [#allocation7 + $0x1], 1 }
 0x36b   :  { %792 = vsyncpa [#allocation10], 1 }
 0x36c   :  { %793 = vsyncpa [#allocation5], 1 }
 0x36d   :  { %795 = vsyncpa [#allocation5 + $0x1], 1 }

</bundles_post_ra>
